<compile_context>
chip_gen: v6e
topology: v6e:2x2x1
jax: 0.10.0
libtpu: 0.0.40
codegen_flags: <defaults>
</compile_context>

<pallas_src>
from functools import partial

import jax
import jax.numpy as jnp
from jax.experimental import pallas as pl
from jax.experimental.pallas import tpu as pltpu


def _round_up(x, m):
    return (x + m - 1) // m * m


def _vmem_capacity_bytes():
    """Per-core VMEM capacity; conservative (v7x) fallback if the query is unavailable."""
    try:
        cap = int(pltpu.get_tpu_info().vmem_capacity_bytes)
        if cap > 0:
            return cap
    except Exception:
        pass
    return 64 * 1024 * 1024


def _pick_tile_b(batch, per_row_bytes, row_budget_bytes):
    """Batch-tile selection.

    - small batches run as a single full-batch block (block == full array dims),
    - otherwise aim for >=2 grid steps (v7x megacore) with large (<=1024 row) tiles,
      multiples of 16 for bf16 sublane packing,
    - and stay within the VMEM budget left over after the resident weights.
    """
    if batch <= 16:
        return batch
    tile = min(1024, _round_up(pl.cdiv(batch, 2), 16))
    if per_row_bytes > 0:
        max_rows = (row_budget_bytes // (4 * per_row_bytes)) // 16 * 16
        if max_rows >= 16:
            tile = min(tile, max_rows)
    return max(16, tile)


def _make_ffnn_kernel(n_hidden, compute_dtype):
    """Kernel arg order: x, mean, (w_i, b_i) * n_hidden, w_out, w_mean, bias_out, out."""

    def kernel(*refs):
        x_ref, mean_ref = refs[0], refs[1]
        hidden_refs = refs[2:2 + 2 * n_hidden]
        wout_ref, wmean_ref, bout_ref, out_ref = refs[2 + 2 * n_hidden:]

        h = x_ref[...]
        for i in range(n_hidden):
            w_ref = hidden_refs[2 * i]
            b_ref = hidden_refs[2 * i + 1]
            # Weights arrive pre-transposed as (in, out): straight MXU matmul, f32 acc.
            acc = jnp.dot(h, w_ref[...], preferred_element_type=jnp.float32)
            acc = acc + b_ref[...]                       # bias add on the f32 accumulator
            h = jnp.maximum(acc, 0.0).astype(compute_dtype)

        out = jnp.dot(h, wout_ref[...], preferred_element_type=jnp.float32)
        out = out + jnp.dot(mean_ref[...], wmean_ref[...],
                            preferred_element_type=jnp.float32)
        out_ref[...] = (out + bout_ref[...]).astype(out_ref.dtype)

    return kernel


def prepare_ffnn_params(params, compute_dtype=jnp.bfloat16):
    """One-time parameter preparation (hoisted out of the forward hot path).

    params = ((w0, b0), ..., (w_last_hidden, b_last_hidden), (w_out, b_out), (w_mean, b_mean))
    with PyTorch layout: w is (out_dim, in_dim), b is (1, out_dim) or (out_dim,).
    Returns (hidden_wb, w_out_T, w_mean_T, fused_bias) with weights transposed to
    (in, out) in `compute_dtype` and biases kept in f32.
    """
    hidden_params = params[:-2]
    w_out, b_out = params[-2]
    w_mean, b_mean = params[-1]

    hidden_wb = []
    for w, b in hidden_params:
        hidden_wb.append(jnp.asarray(w, jnp.float32).T.astype(compute_dtype))   # (in, out)
        hidden_wb.append(jnp.asarray(b, jnp.float32).reshape(1, -1))            # (1, out) f32
    wout_t = jnp.asarray(w_out, jnp.float32).T.astype(compute_dtype)
    wmean_t = jnp.asarray(w_mean, jnp.float32).T.astype(compute_dtype)
    bias = (jnp.asarray(b_out, jnp.float32).reshape(1, -1)
            + jnp.asarray(b_mean, jnp.float32).reshape(1, -1))                  # folded, f32
    return (tuple(hidden_wb), wout_t, wmean_t, bias)


@partial(jax.jit, static_argnames=("single_buffer_weights",))
def ffnn_forward(x, mean, prepared, *, single_buffer_weights=True):
    """x: (B, context_length, n_features), mean: (B, mean_in); prepared from prepare_ffnn_params."""
    hidden_wb, wout_t, wmean_t, bias = prepared
    hidden_wb = tuple(hidden_wb)
    n_hidden = len(hidden_wb) // 2

    batch, context_length, n_features = x.shape
    compute_dtype = wout_t.dtype
    ebytes = jnp.dtype(compute_dtype).itemsize

    x_flat = x.reshape(batch, -1).astype(compute_dtype)
    mean_c = mean.astype(compute_dtype)
    in_dim = x_flat.shape[1]
    mean_in = mean_c.shape[1]
    out_dim = wout_t.shape[1]

    # --- VMEM budget (generation-aware) and batch tiling -----------------------------------
    weight_bytes = (sum(a.size * a.dtype.itemsize for a in hidden_wb)
                    + wout_t.size * ebytes + wmean_t.size * ebytes + bias.size * 4)
    resident_bytes = weight_bytes if single_buffer_weights else 2 * weight_bytes

    vmem_cap = _vmem_capacity_bytes()
    vmem_budget_cap = int(vmem_cap * 0.8)          # ~51 MiB on v7x, ~100 MiB on v5e/v6e

    per_row_bytes = ebytes * (in_dim + mean_in) + 4 * out_dim
    tile_b = _pick_tile_b(batch, per_row_bytes, vmem_budget_cap - resident_bytes)
    grid = (pl.cdiv(batch, tile_b),)

    per_step_bytes = 2 * tile_b * per_row_bytes    # double-buffered streamed x/mean/out blocks
    vmem_limit = int(min(vmem_budget_cap,
                         max(8 * 1024 * 1024, 2 * (resident_bytes + per_step_bytes))))

    # --- BlockSpecs -------------------------------------------------------------------------
    const_map = lambda i: (0, 0)   # weights/biases: resident across all grid steps
    if single_buffer_weights:
        def w_spec(shape):
            return pl.BlockSpec(shape, const_map, pipeline_mode=pl.Buffered(1))
    else:
        def w_spec(shape):
            return pl.BlockSpec(shape, const_map)

    in_specs = [
        pl.BlockSpec((tile_b, in_dim), lambda i: (i, 0)),
        pl.BlockSpec((tile_b, mean_in), lambda i: (i, 0)),
    ]
    for arr in hidden_wb:
        in_specs.append(w_spec(arr.shape))
    in_specs += [w_spec(wout_t.shape), w_spec(wmean_t.shape), w_spec(bias.shape)]
    out_specs = pl.BlockSpec((tile_b, out_dim), lambda i: (i, 0))

    # --- Cost estimate (unpadded dims; include output writeback) -----------------------------
    hdims = [hidden_wb[2 * i].shape[1] for i in range(n_hidden)]
    dims = [in_dim] + hdims
    flops = sum(2 * batch * a * b for a, b in zip(dims[:-1], dims[1:]))
    flops += 2 * batch * dims[-1] * out_dim + 2 * batch * mean_in * out_dim
    bytes_accessed = weight_bytes + batch * (ebytes * (in_dim + mean_in) + 4 * out_dim)
    cost = pl.CostEstimate(flops=int(flops), transcendentals=0,
                           bytes_accessed=int(bytes_accessed))

    out_flat = pl.pallas_call(
        _make_ffnn_kernel(n_hidden, compute_dtype),
        out_shape=jax.ShapeDtypeStruct((batch, out_dim), jnp.float32),
        grid=grid,
        in_specs=in_specs,
        out_specs=out_specs,
        compiler_params=pltpu.CompilerParams(
            dimension_semantics=("parallel",),
            vmem_limit_bytes=vmem_limit,
        ),
        cost_estimate=cost,
    )(x_flat, mean_c, *hidden_wb, wout_t, wmean_t, bias)

    return out_flat.reshape(batch, -1, n_features)


def init_linear(key, in_dim, out_dim):
    """Deterministic PyTorch-like uniform(-1/sqrt(in), 1/sqrt(in)) init."""
    kw, kb = jax.random.split(key)
    bound = 1.0 / jnp.sqrt(jnp.float32(in_dim))
    w = jax.random.uniform(kw, (out_dim, in_dim), jnp.float32, -bound, bound)
    b = jax.random.uniform(kb, (1, out_dim), jnp.float32, -bound, bound)
    return w, b


if __name__ == "__main__":
    # Configuration (small, consistent with the module's forward)
    batch = 2
    context_length = 8
    n_features = 4
    prediction_length = 4
    num_hidden_dimensions = [32, 32]
    mean_in_dim = n_features  # mean_layer: Linear(n_features, prediction_length * n_features)

    key = jax.random.PRNGKey(0)
    kx, kmean, k0, k1, k2, km = jax.random.split(key, 6)

    in_dim = n_features * context_length
    out_dim = prediction_length * n_features
    w0, b0 = init_linear(k0, in_dim, num_hidden_dimensions[0])
    w1, b1 = init_linear(k1, num_hidden_dimensions[0], num_hidden_dimensions[1])
    w2, b2 = init_linear(k2, num_hidden_dimensions[1], out_dim)
    wm, bm = init_linear(km, mean_in_dim, out_dim)
    params = ((w0, b0), (w1, b1), (w2, b2), (wm, bm))

    x = jax.random.normal(kx, (batch, context_length, n_features), jnp.float32)
    mean = jax.random.normal(kmean, (batch, mean_in_dim), jnp.float32)

    # One-time parameter preparation (layout + bf16 cast), outside the hot path.
    prepared = prepare_ffnn_params(params, compute_dtype=jnp.bfloat16)

    try:
        out = jax.block_until_ready(
            ffnn_forward(x, mean, prepared, single_buffer_weights=True))
    except Exception:
        # Fallback if pipeline_mode=pl.Buffered(1) is unsupported on this JAX version.
        out = jax.block_until_ready(
            ffnn_forward(x, mean, prepared, single_buffer_weights=False))

    # Pure-JAX f32 reference (same math as the PyTorch module).
    x_flat = x.reshape(batch, -1)
    h = jnp.maximum(x_flat @ w0.T + b0, 0.0)
    h = jnp.maximum(h @ w1.T + b1, 0.0)
    ref = (h @ w2.T + b2) + (mean @ wm.T + bm)
    ref = ref.reshape(batch, -1, n_features)

    assert out.shape == (batch, prediction_length, n_features)
    # bf16 weights/activations with f32 accumulation -> loosened tolerance vs f32 reference.
    assert jnp.allclose(out.astype(jnp.float32), ref, atol=3e-2, rtol=3e-2)

    print("KERNEL_OK")
</pallas_src>

<mosaic_0001>
module attributes {stable_mosaic.version = 11 : i64} {
  func.func @kernel(%arg0: i32, %arg1: memref<2x32xbf16, #tpu.memory_space<vmem>>, %arg2: memref<2x4xbf16, #tpu.memory_space<vmem>>, %arg3: memref<32x32xbf16, #tpu.memory_space<vmem>>, %arg4: memref<1x32xf32, #tpu.memory_space<vmem>>, %arg5: memref<32x32xbf16, #tpu.memory_space<vmem>>, %arg6: memref<1x32xf32, #tpu.memory_space<vmem>>, %arg7: memref<32x16xbf16, #tpu.memory_space<vmem>>, %arg8: memref<4x16xbf16, #tpu.memory_space<vmem>>, %arg9: memref<1x16xf32, #tpu.memory_space<vmem>>, %arg10: memref<2x16xf32, #tpu.memory_space<vmem>>) attributes {dimension_semantics = [#tpu.dimension_semantics<parallel>], iteration_bounds = array<i64: 1>, scalar_prefetch = 0 : i64, scratch_operands = 0 : i64, tpu.core_type = #tpu.core_type<tc>, window_params = [{transform_indices = @transform_0, window_bounds = array<i64: 2, 32>}, {transform_indices = @transform_1, window_bounds = array<i64: 2, 4>}, {pipeline_mode = #tpu.pipeline_mode<synchronous>, transform_indices = @transform_2, window_bounds = array<i64: 32, 32>}, {pipeline_mode = #tpu.pipeline_mode<synchronous>, transform_indices = @transform_3, window_bounds = array<i64: 1, 32>}, {pipeline_mode = #tpu.pipeline_mode<synchronous>, transform_indices = @transform_4, window_bounds = array<i64: 32, 32>}, {pipeline_mode = #tpu.pipeline_mode<synchronous>, transform_indices = @transform_5, window_bounds = array<i64: 1, 32>}, {pipeline_mode = #tpu.pipeline_mode<synchronous>, transform_indices = @transform_6, window_bounds = array<i64: 32, 16>}, {pipeline_mode = #tpu.pipeline_mode<synchronous>, transform_indices = @transform_7, window_bounds = array<i64: 4, 16>}, {pipeline_mode = #tpu.pipeline_mode<synchronous>, transform_indices = @transform_8, window_bounds = array<i64: 1, 16>}, {transform_indices = @transform_9, window_bounds = array<i64: 2, 16>}]} {
    %c0 = arith.constant 0 : index
    %c0_0 = arith.constant 0 : index
    %0 = vector.load %arg1[%c0, %c0_0] : memref<2x32xbf16, #tpu.memory_space<vmem>>, vector<2x32xbf16>
    %c0_1 = arith.constant 0 : index
    %c0_2 = arith.constant 0 : index
    %1 = vector.load %arg3[%c0_1, %c0_2] : memref<32x32xbf16, #tpu.memory_space<vmem>>, vector<32x32xbf16>
    %cst = arith.constant dense<0.000000e+00> : vector<2x32xf32>
    %2 = tpu.matmul %0, %1, %cst {dimension_numbers = #tpu.dot_dimension_numbers<[1], [0], [0], [1], [0, 0, 1, 1], [], []>} : vector<2x32xbf16>, vector<32x32xbf16>, vector<2x32xf32> -> vector<2x32xf32>
    %c0_3 = arith.constant 0 : index
    %c0_4 = arith.constant 0 : index
    %3 = vector.load %arg4[%c0_3, %c0_4] : memref<1x32xf32, #tpu.memory_space<vmem>>, vector<1x32xf32>
    %4 = vector.broadcast %3 : vector<1x32xf32> to vector<2x32xf32>
    %5 = arith.addf %2, %4 : vector<2x32xf32>
    %cst_5 = arith.constant 0.000000e+00 : f32
    %6 = vector.broadcast %cst_5 : f32 to vector<2x32xf32>
    %7 = arith.maximumf %5, %6 : vector<2x32xf32>
    %8 = arith.truncf %7 : vector<2x32xf32> to vector<2x32xbf16>
    %c0_6 = arith.constant 0 : index
    %c0_7 = arith.constant 0 : index
    %9 = vector.load %arg5[%c0_6, %c0_7] : memref<32x32xbf16, #tpu.memory_space<vmem>>, vector<32x32xbf16>
    %cst_8 = arith.constant dense<0.000000e+00> : vector<2x32xf32>
    %10 = tpu.matmul %8, %9, %cst_8 {dimension_numbers = #tpu.dot_dimension_numbers<[1], [0], [0], [1], [0, 0, 1, 1], [], []>} : vector<2x32xbf16>, vector<32x32xbf16>, vector<2x32xf32> -> vector<2x32xf32>
    %c0_9 = arith.constant 0 : index
    %c0_10 = arith.constant 0 : index
    %11 = vector.load %arg6[%c0_9, %c0_10] : memref<1x32xf32, #tpu.memory_space<vmem>>, vector<1x32xf32>
    %12 = vector.broadcast %11 : vector<1x32xf32> to vector<2x32xf32>
    %13 = arith.addf %10, %12 : vector<2x32xf32>
    %cst_11 = arith.constant 0.000000e+00 : f32
    %14 = vector.broadcast %cst_11 : f32 to vector<2x32xf32>
    %15 = arith.maximumf %13, %14 : vector<2x32xf32>
    %16 = arith.truncf %15 : vector<2x32xf32> to vector<2x32xbf16>
    %c0_12 = arith.constant 0 : index
    %c0_13 = arith.constant 0 : index
    %17 = vector.load %arg7[%c0_12, %c0_13] : memref<32x16xbf16, #tpu.memory_space<vmem>>, vector<32x16xbf16>
    %cst_14 = arith.constant dense<0.000000e+00> : vector<2x16xf32>
    %18 = tpu.matmul %16, %17, %cst_14 {dimension_numbers = #tpu.dot_dimension_numbers<[1], [0], [0], [1], [0, 0, 1, 1], [], []>} : vector<2x32xbf16>, vector<32x16xbf16>, vector<2x16xf32> -> vector<2x16xf32>
    %c0_15 = arith.constant 0 : index
    %c0_16 = arith.constant 0 : index
    %19 = vector.load %arg2[%c0_15, %c0_16] : memref<2x4xbf16, #tpu.memory_space<vmem>>, vector<2x4xbf16>
    %c0_17 = arith.constant 0 : index
    %c0_18 = arith.constant 0 : index
    %20 = vector.load %arg8[%c0_17, %c0_18] : memref<4x16xbf16, #tpu.memory_space<vmem>>, vector<4x16xbf16>
    %cst_19 = arith.constant dense<0.000000e+00> : vector<2x16xf32>
    %21 = tpu.matmul %19, %20, %cst_19 {dimension_numbers = #tpu.dot_dimension_numbers<[1], [0], [0], [1], [0, 0, 1, 1], [], []>} : vector<2x4xbf16>, vector<4x16xbf16>, vector<2x16xf32> -> vector<2x16xf32>
    %22 = arith.addf %18, %21 : vector<2x16xf32>
    %c0_20 = arith.constant 0 : index
    %c0_21 = arith.constant 0 : index
    %23 = vector.load %arg9[%c0_20, %c0_21] : memref<1x16xf32, #tpu.memory_space<vmem>>, vector<1x16xf32>
    %24 = vector.broadcast %23 : vector<1x16xf32> to vector<2x16xf32>
    %25 = arith.addf %22, %24 : vector<2x16xf32>
    %c0_22 = arith.constant 0 : index
    %c0_23 = arith.constant 0 : index
    %26 = vector.load %arg10[%c0_22, %c0_23] : memref<2x16xf32, #tpu.memory_space<vmem>>, vector<2x16xf32>
    tpu.vector_store %arg10[%c0_22, %c0_23], %25 {strides = array<i32>} : memref<2x16xf32, #tpu.memory_space<vmem>>, vector<2x16xf32>,
    return
  }
  func.func @transform_0(%arg0: i32) -> (i32, i32) {
    %c0_i32 = arith.constant 0 : i32
    %c0_i32_0 = arith.constant 0 : i32
    return %arg0, %c0_i32 : i32, i32
  }
  func.func @transform_1(%arg0: i32) -> (i32, i32) {
    %c0_i32 = arith.constant 0 : i32
    %c0_i32_0 = arith.constant 0 : i32
    return %arg0, %c0_i32 : i32, i32
  }
  func.func @transform_2(%arg0: i32) -> (i32, i32) {
    %c0_i32 = arith.constant 0 : i32
    %c0_i32_0 = arith.constant 0 : i32
    %c0_i32_1 = arith.constant 0 : i32
    return %c0_i32, %c0_i32_0 : i32, i32
  }
  func.func @transform_3(%arg0: i32) -> (i32, i32) {
    %c0_i32 = arith.constant 0 : i32
    %c0_i32_0 = arith.constant 0 : i32
    %c0_i32_1 = arith.constant 0 : i32
    return %c0_i32, %c0_i32_0 : i32, i32
  }
  func.func @transform_4(%arg0: i32) -> (i32, i32) {
    %c0_i32 = arith.constant 0 : i32
    %c0_i32_0 = arith.constant 0 : i32
    %c0_i32_1 = arith.constant 0 : i32
    return %c0_i32, %c0_i32_0 : i32, i32
  }
  func.func @transform_5(%arg0: i32) -> (i32, i32) {
    %c0_i32 = arith.constant 0 : i32
    %c0_i32_0 = arith.constant 0 : i32
    %c0_i32_1 = arith.constant 0 : i32
    return %c0_i32, %c0_i32_0 : i32, i32
  }
  func.func @transform_6(%arg0: i32) -> (i32, i32) {
    %c0_i32 = arith.constant 0 : i32
    %c0_i32_0 = arith.constant 0 : i32
    %c0_i32_1 = arith.constant 0 : i32
    return %c0_i32, %c0_i32_0 : i32, i32
  }
  func.func @transform_7(%arg0: i32) -> (i32, i32) {
    %c0_i32 = arith.constant 0 : i32
    %c0_i32_0 = arith.constant 0 : i32
    %c0_i32_1 = arith.constant 0 : i32
    return %c0_i32, %c0_i32_0 : i32, i32
  }
  func.func @transform_8(%arg0: i32) -> (i32, i32) {
    %c0_i32 = arith.constant 0 : i32
    %c0_i32_0 = arith.constant 0 : i32
    %c0_i32_1 = arith.constant 0 : i32
    return %c0_i32, %c0_i32_0 : i32, i32
  }
  func.func @transform_9(%arg0: i32) -> (i32, i32) {
    %c0_i32 = arith.constant 0 : i32
    %c0_i32_0 = arith.constant 0 : i32
    return %arg0, %c0_i32 : i32, i32
  }
}

module attributes {stable_mosaic.version = 11 : i64} {
  func.func @kernel(%arg0: i32, %arg1: memref<2x32xbf16, #tpu.memory_space<vmem>>, %arg2: memref<2x4xbf16, #tpu.memory_space<vmem>>, %arg3: memref<32x32xbf16, #tpu.memory_space<vmem>>, %arg4: memref<1x32xf32, #tpu.memory_space<vmem>>, %arg5: memref<32x32xbf16, #tpu.memory_space<vmem>>, %arg6: memref<1x32xf32, #tpu.memory_space<vmem>>, %arg7: memref<32x16xbf16, #tpu.memory_space<vmem>>, %arg8: memref<4x16xbf16, #tpu.memory_space<vmem>>, %arg9: memref<1x16xf32, #tpu.memory_space<vmem>>, %arg10: memref<2x16xf32, #tpu.memory_space<vmem>>) attributes {dimension_semantics = [#tpu.dimension_semantics<parallel>], iteration_bounds = array<i64: 1>, scalar_prefetch = 0 : i64, scratch_operands = 0 : i64, tpu.core_type = #tpu.core_type<tc>, window_params = [{transform_indices = @transform_0, window_bounds = array<i64: 2, 32>}, {transform_indices = @transform_1, window_bounds = array<i64: 2, 4>}, {pipeline_mode = #tpu.pipeline_mode<synchronous>, transform_indices = @transform_2, window_bounds = array<i64: 32, 32>}, {pipeline_mode = #tpu.pipeline_mode<synchronous>, transform_indices = @transform_3, window_bounds = array<i64: 1, 32>}, {pipeline_mode = #tpu.pipeline_mode<synchronous>, transform_indices = @transform_4, window_bounds = array<i64: 32, 32>}, {pipeline_mode = #tpu.pipeline_mode<synchronous>, transform_indices = @transform_5, window_bounds = array<i64: 1, 32>}, {pipeline_mode = #tpu.pipeline_mode<synchronous>, transform_indices = @transform_6, window_bounds = array<i64: 32, 16>}, {pipeline_mode = #tpu.pipeline_mode<synchronous>, transform_indices = @transform_7, window_bounds = array<i64: 4, 16>}, {pipeline_mode = #tpu.pipeline_mode<synchronous>, transform_indices = @transform_8, window_bounds = array<i64: 1, 16>}, {transform_indices = @transform_9, window_bounds = array<i64: 2, 16>}]} {
    %c0 = arith.constant 0 : index
    %c0_0 = arith.constant 0 : index
    %0 = vector.load %arg1[%c0, %c0_0] : memref<2x32xbf16, #tpu.memory_space<vmem>>, vector<2x32xbf16>
    %c0_1 = arith.constant 0 : index
    %c0_2 = arith.constant 0 : index
    %1 = vector.load %arg3[%c0_1, %c0_2] : memref<32x32xbf16, #tpu.memory_space<vmem>>, vector<32x32xbf16>
    %cst = arith.constant dense<0.000000e+00> : vector<2x32xf32>
    %2 = tpu.matmul %0, %1, %cst {dimension_numbers = #tpu.dot_dimension_numbers<[1], [0], [0], [1], [0, 0, 1, 1], [], []>} : vector<2x32xbf16>, vector<32x32xbf16>, vector<2x32xf32> -> vector<2x32xf32>
    %c0_3 = arith.constant 0 : index
    %c0_4 = arith.constant 0 : index
    %3 = vector.load %arg4[%c0_3, %c0_4] : memref<1x32xf32, #tpu.memory_space<vmem>>, vector<1x32xf32>
    %4 = vector.broadcast %3 : vector<1x32xf32> to vector<2x32xf32>
    %5 = arith.addf %2, %4 : vector<2x32xf32>
    %cst_5 = arith.constant 0.000000e+00 : f32
    %6 = vector.broadcast %cst_5 : f32 to vector<2x32xf32>
    %7 = arith.maximumf %5, %6 : vector<2x32xf32>
    %8 = arith.truncf %7 : vector<2x32xf32> to vector<2x32xbf16>
    %c0_6 = arith.constant 0 : index
    %c0_7 = arith.constant 0 : index
    %9 = vector.load %arg5[%c0_6, %c0_7] : memref<32x32xbf16, #tpu.memory_space<vmem>>, vector<32x32xbf16>
    %cst_8 = arith.constant dense<0.000000e+00> : vector<2x32xf32>
    %10 = tpu.matmul %8, %9, %cst_8 {dimension_numbers = #tpu.dot_dimension_numbers<[1], [0], [0], [1], [0, 0, 1, 1], [], []>} : vector<2x32xbf16>, vector<32x32xbf16>, vector<2x32xf32> -> vector<2x32xf32>
    %c0_9 = arith.constant 0 : index
    %c0_10 = arith.constant 0 : index
    %11 = vector.load %arg6[%c0_9, %c0_10] : memref<1x32xf32, #tpu.memory_space<vmem>>, vector<1x32xf32>
    %12 = vector.broadcast %11 : vector<1x32xf32> to vector<2x32xf32>
    %13 = arith.addf %10, %12 : vector<2x32xf32>
    %cst_11 = arith.constant 0.000000e+00 : f32
    %14 = vector.broadcast %cst_11 : f32 to vector<2x32xf32>
    %15 = arith.maximumf %13, %14 : vector<2x32xf32>
    %16 = arith.truncf %15 : vector<2x32xf32> to vector<2x32xbf16>
    %c0_12 = arith.constant 0 : index
    %c0_13 = arith.constant 0 : index
    %17 = vector.load %arg7[%c0_12, %c0_13] : memref<32x16xbf16, #tpu.memory_space<vmem>>, vector<32x16xbf16>
    %cst_14 = arith.constant dense<0.000000e+00> : vector<2x16xf32>
    %18 = tpu.matmul %16, %17, %cst_14 {dimension_numbers = #tpu.dot_dimension_numbers<[1], [0], [0], [1], [0, 0, 1, 1], [], []>} : vector<2x32xbf16>, vector<32x16xbf16>, vector<2x16xf32> -> vector<2x16xf32>
    %c0_15 = arith.constant 0 : index
    %c0_16 = arith.constant 0 : index
    %19 = vector.load %arg2[%c0_15, %c0_16] : memref<2x4xbf16, #tpu.memory_space<vmem>>, vector<2x4xbf16>
    %c0_17 = arith.constant 0 : index
    %c0_18 = arith.constant 0 : index
    %20 = vector.load %arg8[%c0_17, %c0_18] : memref<4x16xbf16, #tpu.memory_space<vmem>>, vector<4x16xbf16>
    %cst_19 = arith.constant dense<0.000000e+00> : vector<2x16xf32>
    %21 = tpu.matmul %19, %20, %cst_19 {dimension_numbers = #tpu.dot_dimension_numbers<[1], [0], [0], [1], [0, 0, 1, 1], [], []>} : vector<2x4xbf16>, vector<4x16xbf16>, vector<2x16xf32> -> vector<2x16xf32>
    %22 = arith.addf %18, %21 : vector<2x16xf32>
    %c0_20 = arith.constant 0 : index
    %c0_21 = arith.constant 0 : index
    %23 = vector.load %arg9[%c0_20, %c0_21] : memref<1x16xf32, #tpu.memory_space<vmem>>, vector<1x16xf32>
    %24 = vector.broadcast %23 : vector<1x16xf32> to vector<2x16xf32>
    %25 = arith.addf %22, %24 : vector<2x16xf32>
    %c0_22 = arith.constant 0 : index
    %c0_23 = arith.constant 0 : index
    %26 = vector.load %arg10[%c0_22, %c0_23] : memref<2x16xf32, #tpu.memory_space<vmem>>, vector<2x16xf32>
    tpu.vector_store %arg10[%c0_22, %c0_23], %25 {strides = array<i32>} : memref<2x16xf32, #tpu.memory_space<vmem>>, vector<2x16xf32>,
    return
  }
  func.func @transform_0(%arg0: i32) -> (i32, i32) {
    %c0_i32 = arith.constant 0 : i32
    %c0_i32_0 = arith.constant 0 : i32
    return %arg0, %c0_i32 : i32, i32
  }
  func.func @transform_1(%arg0: i32) -> (i32, i32) {
    %c0_i32 = arith.constant 0 : i32
    %c0_i32_0 = arith.constant 0 : i32
    return %arg0, %c0_i32 : i32, i32
  }
  func.func @transform_2(%arg0: i32) -> (i32, i32) {
    %c0_i32 = arith.constant 0 : i32
    %c0_i32_0 = arith.constant 0 : i32
    %c0_i32_1 = arith.constant 0 : i32
    return %c0_i32, %c0_i32_0 : i32, i32
  }
  func.func @transform_3(%arg0: i32) -> (i32, i32) {
    %c0_i32 = arith.constant 0 : i32
    %c0_i32_0 = arith.constant 0 : i32
    %c0_i32_1 = arith.constant 0 : i32
    return %c0_i32, %c0_i32_0 : i32, i32
  }
  func.func @transform_4(%arg0: i32) -> (i32, i32) {
    %c0_i32 = arith.constant 0 : i32
    %c0_i32_0 = arith.constant 0 : i32
    %c0_i32_1 = arith.constant 0 : i32
    return %c0_i32, %c0_i32_0 : i32, i32
  }
  func.func @transform_5(%arg0: i32) -> (i32, i32) {
    %c0_i32 = arith.constant 0 : i32
    %c0_i32_0 = arith.constant 0 : i32
    %c0_i32_1 = arith.constant 0 : i32
    return %c0_i32, %c0_i32_0 : i32, i32
  }
  func.func @transform_6(%arg0: i32) -> (i32, i32) {
    %c0_i32 = arith.constant 0 : i32
    %c0_i32_0 = arith.constant 0 : i32
    %c0_i32_1 = arith.constant 0 : i32
    return %c0_i32, %c0_i32_0 : i32, i32
  }
  func.func @transform_7(%arg0: i32) -> (i32, i32) {
    %c0_i32 = arith.constant 0 : i32
    %c0_i32_0 = arith.constant 0 : i32
    %c0_i32_1 = arith.constant 0 : i32
    return %c0_i32, %c0_i32_0 : i32, i32
  }
  func.func @transform_8(%arg0: i32) -> (i32, i32) {
    %c0_i32 = arith.constant 0 : i32
    %c0_i32_0 = arith.constant 0 : i32
    %c0_i32_1 = arith.constant 0 : i32
    return %c0_i32, %c0_i32_0 : i32, i32
  }
  func.func @transform_9(%arg0: i32) -> (i32, i32) {
    %c0_i32 = arith.constant 0 : i32
    %c0_i32_0 = arith.constant 0 : i32
    return %arg0, %c0_i32 : i32, i32
  }
}

</mosaic_0001>

<bundles_post_ra>
// kernel: ffnn_forward.1
= control target key start
LH: loop header
LB: loop body
LE: loop exit
PB: predicated region body
PF: predicated region fallthrough
CT: control target
= control target key end

     0   :  { %v356_v0 = vmov 0.0   ;;  %vm357_vm0 = vmmov 0   ;;  %vm57_vm1 = vcmask 261120   ;;  %vm181_vm2 = vcmask 1041408   ;;  %s454_s2 = inlined_call_operand.vmem [shape: bf16[32,32], index: 2, kind: input, shape index: {}]   ;;  %s455_s0 = inlined_call_operand.vmem [shape: bf16[2,32], index: 0, kind: input, shape index: {}]   ;;  %s456_s4 = inlined_call_operand.vmem [shape: bf16[32,32], index: 4, kind: input, shape index: {}]   ;;  %s457_s7 = inlined_call_operand.vmem [shape: bf16[4,16], index: 7, kind: input, shape index: {}]   ;;  %s458_s6 = inlined_call_operand.vmem [shape: bf16[32,16], index: 6, kind: input, shape index: {}]   ;;  %s459_s3 = inlined_call_operand.vmem [shape: f32[1,32], index: 3, kind: input, shape index: {}]   ;;  %s460_s1 = inlined_call_operand.vmem [shape: bf16[2,4], index: 1, kind: input, shape index: {}]   ;;  %s461_s5 = inlined_call_operand.vmem [shape: f32[1,32], index: 5, kind: input, shape index: {}]   ;;  %s462_s8 = inlined_call_operand.vmem [shape: f32[1,16], index: 8, kind: input, shape index: {}]   ;;  %s463_s9 = inlined_call_operand.vmem [shape: f32[2,16], index: 9, kind: output, shape index: {}]  }
   0x1   :  { %318 = vmatprep.subr.bf16.mxu0 %v356_v0  ;;  %v350_v1 = vld [vmem:[%s454_s2 + $0x8] sm:$0xff]   ;;  %322 = vmatprep.mubr.msk.bf16.mxu0 %vm357_vm0, %v356_v0  ;;  %v351_v2 = vld [vmem:[%s454_s2] sm:$0xff]   ;;  %vm177_vm3 = vcmask 31744   ;;  %vm288_vm4 = vcmask 123904  }
   0x2   :  { %326 = vmatprep.subr.bf16.mxu1 %v356_v0  ;;  %330 = vmatprep.mubr.msk.bf16.mxu1 %vm357_vm0, %v356_v0  ;;  %v33_v3 = vld [vmem:[%s455_s0] sm:$0x1]  ;;  %v352_v4 = vld [vmem:[%s456_s4 + $0x8] sm:$0xff]  }
   0x3   :  { %319 = vmatpush3.bf16.msra.mxu0 %v350_v1  ;;  %327 = vmatpush3.bf16.msra.mxu1 %v352_v4  ;;  %v353_v5 = vld [vmem:[%s456_s4] sm:$0xff]   ;;  %v354_v14 = vld [vmem:[%s458_s6 + $0x8] sm:$0xff]  }
   0x4   :  { %320 = vmatprep.subr.bf16.mxu0 %v356_v0  ;;  %328 = vmatprep.subr.bf16.mxu1 %v356_v0  ;;  %v176_v6 = vld [vmem:[%s457_s7] sm:$0x3] }
   0x5   :  { %v183_v7 = vsel %vm181_vm2, %v176_v6, 0  ;;  %v294_v8 = vld [vmem:[%s459_s3] ss:$0 sm:$0xff] }
   0x6   :  { %v175_v17 = vld [vmem:[%s460_s1] sm:$0x1] }
   0x7   :  { %321 = vmatpush3.bf16.msra.mxu0 %v351_v2  ;;  %329 = vmatpush3.bf16.msra.mxu1 %v353_v5  ;;  %v355_v18 = vld [vmem:[%s458_s6] sm:$0xff]  }
   0x8   :  { %334 = vmatprep.subr.bf16.mxu0 %v356_v0  ;;  %340 = vmatprep.subr.bf16.mxu1 %v356_v0  ;;  %v298_v19 = vld [vmem:[%s461_s5] ss:$0 sm:$0xff] }
   0x9   :  { %v306_v32 = vld [vmem:[%s462_s8] ss:$0 sm:$0xff] }
   0xa   :  { %323 = vmatmul.mubr.msk.bf16.vlgmr.msra.gmra.mxu0 %vm57_vm1, %v33_v3 }
   0xb   :  { %336 = vmatprep.mubr.msk.bf16.mxu0 %vm357_vm0, %v356_v0  ;;  %335 = vmatpush3.bf16.msra.mxu0 %v183_v7 }
  0x12   :  { %337 = vmatmul.mubr.msk.bf16.vlgmr.msra.gmra.mxu0 %vm177_vm3, %v175_v17 }
  0xca   :  { %v95_v9 = vpop.f32.mrf.mxu0 }
  0xcb   :  { %v96_v10 = vadd.f32 %v294_v8, %v95_v9 }
  0xcc   :  { %v324_v11 = vpop.f32.mrf.mxu0 }
  0xcd   :  { %v101_v12 = vmax.f32 %v96_v10, 0.0 }
  0xce   :  { %v98_v13 = vpop.f32.mrf.mxu0 }
  0xcf   :  { %v102_v15 = vpack.c.bf16 %v101_v12, %v101_v12 }
  0xd0   :  { %v325_v16 = vpop.f32.mrf.mxu0 }
  0xd1   :  { %331 = vmatmul.mubr.msk.bf16.vlgmr.msra.gmra.mxu1 %vm57_vm1, %v102_v15 }
  0xd2   :  { %341 = vmatpush3.bf16.msra.mxu1 %v354_v14  ;;  %344 = vmatprep.mubr.msk.bf16.mxu1 %vm357_vm0, %v356_v0  ;;  %v219_v27 = vpop.f32.mrf.mxu0 }
  0xd3   :  { %342 = vmatprep.subr.bf16.mxu1 %v356_v0 }
  0xd4   :  { %v338_v28 = vpop.f32.mrf.mxu0 }
  0xd6   :  { %343 = vmatpush3.bf16.msra.mxu1 %v355_v18  ;;  %v222_v29 = vpop.f32.mrf.mxu0 }
  0xd8   :  { %v339_v30 = vpop.f32.mrf.mxu0 }
 0x191   :  { %v163_v20 = vpop.f32.mrf.mxu1 }
 0x192   :  { %v164_v21 = vadd.f32 %v298_v19, %v163_v20 }
 0x193   :  { %v332_v22 = vpop.f32.mrf.mxu1 }
 0x194   :  { %v169_v23 = vmax.f32 %v164_v21, 0.0 }
 0x195   :  { %v166_v24 = vpop.f32.mrf.mxu1 }
 0x196   :  { %v170_v25 = vpack.c.bf16 %v169_v23, %v169_v23 }
 0x197   :  { %v333_v26 = vpop.f32.mrf.mxu1 }
 0x198   :  { %345 = vmatmul.mubr.msk.bf16.vlgmr.msra.gmra.mxu1 %vm57_vm1, %v170_v25 }
 0x258   :  { %v274_v31 = vpop.f32.mrf.mxu1 }
 0x259   :  { %v275_v33 = vadd.f32 %v274_v31, %v219_v27 }
 0x25a   :  { %v346_v34 = vpop.f32.mrf.mxu1 }
 0x25b   :  { %v287_v35 = vadd.f32 %v306_v32, %v275_v33 }
 0x25c   :  { %v277_v36 = vpop.f32.mrf.mxu1 }
 0x25d   :  { %289 = vst.msk [vmem:[%s463_s9] sm:$0x3] %vm288_vm4, %v287_v35 }
 0x25e   :  { %v347_v37 = vpop.f32.mrf.mxu1 }

// kernel: ffnn_forward.1
= control target key start
LH: loop header
LB: loop body
LE: loop exit
PB: predicated region body
PF: predicated region fallthrough
CT: control target
= control target key end

     0   :  { %v356_v0 = vmov 0.0   ;;  %vm357_vm0 = vmmov 0   ;;  %vm57_vm1 = vcmask 261120   ;;  %vm181_vm2 = vcmask 1041408   ;;  %s454_s2 = inlined_call_operand.vmem [shape: bf16[32,32], index: 2, kind: input, shape index: {}]   ;;  %s455_s0 = inlined_call_operand.vmem [shape: bf16[2,32], index: 0, kind: input, shape index: {}]   ;;  %s456_s4 = inlined_call_operand.vmem [shape: bf16[32,32], index: 4, kind: input, shape index: {}]   ;;  %s457_s7 = inlined_call_operand.vmem [shape: bf16[4,16], index: 7, kind: input, shape index: {}]   ;;  %s458_s6 = inlined_call_operand.vmem [shape: bf16[32,16], index: 6, kind: input, shape index: {}]   ;;  %s459_s3 = inlined_call_operand.vmem [shape: f32[1,32], index: 3, kind: input, shape index: {}]   ;;  %s460_s1 = inlined_call_operand.vmem [shape: bf16[2,4], index: 1, kind: input, shape index: {}]   ;;  %s461_s5 = inlined_call_operand.vmem [shape: f32[1,32], index: 5, kind: input, shape index: {}]   ;;  %s462_s8 = inlined_call_operand.vmem [shape: f32[1,16], index: 8, kind: input, shape index: {}]   ;;  %s463_s9 = inlined_call_operand.vmem [shape: f32[2,16], index: 9, kind: output, shape index: {}]  }
   0x1   :  { %318 = vmatprep.subr.bf16.mxu0 %v356_v0  ;;  %v350_v1 = vld [vmem:[%s454_s2 + $0x8] sm:$0xff]   ;;  %322 = vmatprep.mubr.msk.bf16.mxu0 %vm357_vm0, %v356_v0  ;;  %v351_v2 = vld [vmem:[%s454_s2] sm:$0xff]   ;;  %vm177_vm3 = vcmask 31744   ;;  %vm288_vm4 = vcmask 123904  }
   0x2   :  { %326 = vmatprep.subr.bf16.mxu1 %v356_v0  ;;  %330 = vmatprep.mubr.msk.bf16.mxu1 %vm357_vm0, %v356_v0  ;;  %v33_v3 = vld [vmem:[%s455_s0] sm:$0x1]  ;;  %v352_v4 = vld [vmem:[%s456_s4 + $0x8] sm:$0xff]  }
   0x3   :  { %319 = vmatpush3.bf16.msra.mxu0 %v350_v1  ;;  %327 = vmatpush3.bf16.msra.mxu1 %v352_v4  ;;  %v353_v5 = vld [vmem:[%s456_s4] sm:$0xff]   ;;  %v354_v14 = vld [vmem:[%s458_s6 + $0x8] sm:$0xff]  }
   0x4   :  { %320 = vmatprep.subr.bf16.mxu0 %v356_v0  ;;  %328 = vmatprep.subr.bf16.mxu1 %v356_v0  ;;  %v176_v6 = vld [vmem:[%s457_s7] sm:$0x3] }
   0x5   :  { %v183_v7 = vsel %vm181_vm2, %v176_v6, 0  ;;  %v294_v8 = vld [vmem:[%s459_s3] ss:$0 sm:$0xff] }
   0x6   :  { %v175_v17 = vld [vmem:[%s460_s1] sm:$0x1] }
   0x7   :  { %321 = vmatpush3.bf16.msra.mxu0 %v351_v2  ;;  %329 = vmatpush3.bf16.msra.mxu1 %v353_v5  ;;  %v355_v18 = vld [vmem:[%s458_s6] sm:$0xff]  }
   0x8   :  { %334 = vmatprep.subr.bf16.mxu0 %v356_v0  ;;  %340 = vmatprep.subr.bf16.mxu1 %v356_v0  ;;  %v298_v19 = vld [vmem:[%s461_s5] ss:$0 sm:$0xff] }
   0x9   :  { %v306_v32 = vld [vmem:[%s462_s8] ss:$0 sm:$0xff] }
   0xa   :  { %323 = vmatmul.mubr.msk.bf16.vlgmr.msra.gmra.mxu0 %vm57_vm1, %v33_v3 }
   0xb   :  { %336 = vmatprep.mubr.msk.bf16.mxu0 %vm357_vm0, %v356_v0  ;;  %335 = vmatpush3.bf16.msra.mxu0 %v183_v7 }
  0x12   :  { %337 = vmatmul.mubr.msk.bf16.vlgmr.msra.gmra.mxu0 %vm177_vm3, %v175_v17 }
  0xca   :  { %v95_v9 = vpop.f32.mrf.mxu0 }
  0xcb   :  { %v96_v10 = vadd.f32 %v294_v8, %v95_v9 }
  0xcc   :  { %v324_v11 = vpop.f32.mrf.mxu0 }
  0xcd   :  { %v101_v12 = vmax.f32 %v96_v10, 0.0 }
  0xce   :  { %v98_v13 = vpop.f32.mrf.mxu0 }
  0xcf   :  { %v102_v15 = vpack.c.bf16 %v101_v12, %v101_v12 }
  0xd0   :  { %v325_v16 = vpop.f32.mrf.mxu0 }
  0xd1   :  { %331 = vmatmul.mubr.msk.bf16.vlgmr.msra.gmra.mxu1 %vm57_vm1, %v102_v15 }
  0xd2   :  { %341 = vmatpush3.bf16.msra.mxu1 %v354_v14  ;;  %344 = vmatprep.mubr.msk.bf16.mxu1 %vm357_vm0, %v356_v0  ;;  %v219_v27 = vpop.f32.mrf.mxu0 }
  0xd3   :  { %342 = vmatprep.subr.bf16.mxu1 %v356_v0 }
  0xd4   :  { %v338_v28 = vpop.f32.mrf.mxu0 }
  0xd6   :  { %343 = vmatpush3.bf16.msra.mxu1 %v355_v18  ;;  %v222_v29 = vpop.f32.mrf.mxu0 }
  0xd8   :  { %v339_v30 = vpop.f32.mrf.mxu0 }
 0x191   :  { %v163_v20 = vpop.f32.mrf.mxu1 }
 0x192   :  { %v164_v21 = vadd.f32 %v298_v19, %v163_v20 }
 0x193   :  { %v332_v22 = vpop.f32.mrf.mxu1 }
 0x194   :  { %v169_v23 = vmax.f32 %v164_v21, 0.0 }
 0x195   :  { %v166_v24 = vpop.f32.mrf.mxu1 }
 0x196   :  { %v170_v25 = vpack.c.bf16 %v169_v23, %v169_v23 }
 0x197   :  { %v333_v26 = vpop.f32.mrf.mxu1 }
 0x198   :  { %345 = vmatmul.mubr.msk.bf16.vlgmr.msra.gmra.mxu1 %vm57_vm1, %v170_v25 }
 0x258   :  { %v274_v31 = vpop.f32.mrf.mxu1 }
 0x259   :  { %v275_v33 = vadd.f32 %v274_v31, %v219_v27 }
 0x25a   :  { %v346_v34 = vpop.f32.mrf.mxu1 }
 0x25b   :  { %v287_v35 = vadd.f32 %v306_v32, %v275_v33 }
 0x25c   :  { %v277_v36 = vpop.f32.mrf.mxu1 }
 0x25d   :  { %289 = vst.msk [vmem:[%s463_s9] sm:$0x3] %vm288_vm4, %v287_v35 }
 0x25e   :  { %v347_v37 = vpop.f32.mrf.mxu1 }

</bundles_post_ra>
